<compile_context>
chip_gen: v5e
topology: v5e:2x2
jax: 0.10.0
libtpu: 0.0.40
codegen_flags: <defaults>
</compile_context>

<pallas_src>
import functools
import math

import jax
import jax.numpy as jnp
from jax.experimental import pallas as pl
from jax.experimental.pallas import tpu as pltpu


def _round_up(n, m):
    return ((n + m - 1) // m) * m


def _repr_time_enc_kernel(x_ref, t_ref, divseg_ref, phase_ref, sel_ref,
                          out_ref, mask_ref, *, seg_width, num_seg):
    """One (T, W) tile; W = num_seg * seg_width lanes, num_seg packed positions/row."""
    x = x_ref[...]                       # (T, W)  packed features, f32
    t = t_ref[...]                       # (T, P)  one time value per packed position
    dv = divseg_ref[...]                 # (P, W)  row j = div_full on segment j, else 0
    ph = phase_ref[...]                  # (1, W)  0 on even d, pi/2 on odd d
    sel = sel_ref[...]                   # (W, P)  bf16 0/1 segment indicator

    # src_pad_mask via the (otherwise idle) MXU: count zero features per packed
    # position.  The zero test stays in f32; only the exact 0/1 indicator is
    # cast to bf16, and counts (<= seg_width) are exact in the f32 accumulator.
    is_zero = (x == 0.0).astype(jnp.bfloat16)                              # (T, W)
    zcount = jnp.dot(is_zero, sel, preferred_element_type=jnp.float32)     # (T, P)
    mask_ref[...] = (zcount > seg_width - 0.5).astype(mask_ref.dtype)

    # angle[r, j*D + d] = t[r, j] * div_full[d]; the phase row is folded into
    # the accumulation start so cos(a) == sin(a + pi/2) needs no iota/select.
    # Exact f32 VPU multiplies; off-segment terms contribute exact zeros.
    ang = ph + t[:, 0:1] * dv[0:1, :]
    for j in range(1, num_seg):
        ang = ang + t[:, j:j + 1] * dv[j:j + 1, :]

    # NOTE: jnp.sin lowers to VPU range-reduction + polynomial (~20 VALU
    # ops/elem), not an EUP op — VALU is the compute budget here, which is why
    # the mask reduction was pushed to the MXU and no extra per-element VPU
    # work is added on this path.
    out_ref[...] = (x + jnp.sin(ang)).astype(out_ref.dtype)


def repr_time_enc(x, times, div_term, pred_time, *, tile_rows=8192, donate_x=False):
    """Pallas implementation of ReprTimeEnc.forward (eval mode).

    Args:
      x:         (B, S, D) float32
      times:     (B, S)    float32
      div_term:  (D // 2,) float32 (registered buffer)
      pred_time: python scalar (hours)
      donate_x:  alias x -> out in HBM (only if the caller donates x).
    Returns:
      (x + pe, src_pad_mask): (B, S, D) float32, (B, S) bool.
    """
    B, S, D = x.shape
    assert D % 2 == 0, "pred_dim must be even (as in the PyTorch module)"
    dtype = x.dtype
    N = B * S

    # Pack P consecutive positions per 128-lane row when D divides 128.
    P = 128 // D if (D <= 128 and 128 % D == 0) else 1
    W = P * D

    # Fold "times = pred_time*60 - times" into the wrapper so pred_time is not
    # baked into the Pallas trace (no recompiles when it changes).
    t = (jnp.asarray(float(pred_time) * 60.0, dtype) - times.astype(dtype)).reshape(N)
    x_flat = x.reshape(N, D)

    # Pad only when N is not a multiple of the packing factor (rare).  Row
    # alignment to the tile is NOT required: the grid uses pl.cdiv and Pallas
    # handles the partial final block (reads padded, OOB writes dropped), so
    # the common path has zero extra HBM passes (no jnp.pad, no [:N] slice).
    pad_pos = (-N) % P
    if pad_pos:
        x_flat = jnp.pad(x_flat, ((0, pad_pos), (0, 0)))
        t = jnp.pad(t, ((0, pad_pos),))
    Np = N + pad_pos
    R = Np // P
    xp = x_flat.reshape(R, W)            # free re-view when pad_pos == 0
    tp = t.reshape(R, P)

    # Tile: as large as possible (amortize ~0.35 us/step pipeline overhead) but
    # keep >= ~4 grid steps when R allows so the "parallel" axis can shard
    # across v7x's two TensorCores.  Multiples of 32 sublanes keep every native
    # tiling happy; tiny inputs use one full-extent block (always legal).
    tile = min(_round_up(tile_rows, 32), max(32, _round_up(-(-R // 4), 32)))
    if tile >= R:
        tile = R                         # block_shape == full array dims
    grid = (pl.cdiv(R, tile),)

    # div_full[d] = div_term[d // 2]; divseg[j] carries it on lane segment j only.
    div_full = jnp.repeat(div_term.astype(dtype), 2)                          # (D,)
    divseg = (jnp.eye(P, dtype=dtype)[:, :, None] * div_full[None, None, :]
              ).reshape(P, W)                                                 # (P, W)
    phase = jnp.tile(jnp.array([0.0, math.pi / 2.0], dtype=dtype), W // 2)[None, :]
    # (W, P) 0/1 segment indicator for the MXU zero-count reduction (exact in bf16).
    sel = jnp.repeat(jnp.eye(P, dtype=jnp.bfloat16), D, axis=0)               # (W, P)

    # VMEM budget: x/out blocks + lane-padded t and mask blocks (P -> 128 lanes),
    # double-buffered, plus headroom.  At tile=8192 this is ~32 MiB + slack.
    blk_bytes = tile * (2 * W * 4 + 128 * 4 + 128 * 4)
    vmem_limit = int(min(60 * 1024 * 1024, 2 * blk_bytes + (8 << 20)))

    cost = pl.CostEstimate(
        flops=Np * D * (4 * P + 4),      # angle accumulation + add + MXU zero-count
        transcendentals=Np * D,          # one sin per element
        bytes_accessed=2 * Np * D * 4 + Np * 4 + Np * 4,
    )

    kernel = functools.partial(_repr_time_enc_kernel, seg_width=D, num_seg=P)
    out_p, mask_p = pl.pallas_call(
        kernel,
        grid=grid,
        in_specs=[
            pl.BlockSpec((tile, W), lambda i: (i, 0)),   # x tile (streamed)
            pl.BlockSpec((tile, P), lambda i: (i, 0)),   # packed times (streamed, lane-sparse)
            pl.BlockSpec((P, W), lambda i: (0, 0)),      # divseg (resident)
            pl.BlockSpec((1, W), lambda i: (0, 0)),      # phase  (resident)
            pl.BlockSpec((W, P), lambda i: (0, 0)),      # segment selector (resident)
        ],
        out_specs=(
            pl.BlockSpec((tile, W), lambda i: (i, 0)),   # out: lane-dense stores
            # TODO(synk): pack the pad mask (int8 / lane-dense) to further cut
            # v5e store-slot pressure; kept int32 here for lowering robustness.
            pl.BlockSpec((tile, P), lambda i: (i, 0)),
        ),
        out_shape=(
            jax.ShapeDtypeStruct((R, W), dtype),
            jax.ShapeDtypeStruct((R, P), jnp.int32),
        ),
        compiler_params=pltpu.CompilerParams(
            dimension_semantics=("parallel",),           # megacore split on v7x
            vmem_limit_bytes=vmem_limit,
        ),
        cost_estimate=cost,
        input_output_aliases=({0: 0} if donate_x else {}),
    )(xp, tp, divseg, phase, sel)

    # TODO(synk): training-mode dropout would use pltpu.prng_seed/prng_random_bits;
    # nn.Dropout is identity in eval mode.
    if pad_pos:
        out = out_p.reshape(Np, D)[:N].reshape(B, S, D)
        mask = mask_p.reshape(Np)[:N].reshape(B, S).astype(jnp.bool_)
    else:
        out = out_p.reshape(B, S, D)
        mask = mask_p.reshape(B, S).astype(jnp.bool_)
    return out, mask


def _reference(x, times, div_term, pred_time):
    """Pure-JAX reference mirroring the PyTorch forward."""
    t = pred_time * 60.0 - times                               # (B, S)
    src_pad_mask = jnp.all(x == 0.0, axis=-1)                  # (B, S)
    angles = t[:, :, None] * div_term[None, None, :]           # (B, S, D//2)
    pe = jnp.zeros_like(x)
    pe = pe.at[:, :, 0::2].set(jnp.sin(angles))
    pe = pe.at[:, :, 1::2].set(jnp.cos(angles))
    return x + pe, src_pad_mask


if __name__ == "__main__":
    # Module hyperparameters (deterministic, in-script "init").
    pred_dim = 32       # D (must be even, as in the PyTorch module)
    dropout_p = 0.1     # unused in eval mode
    pred_time = 24      # hours

    div_term = jnp.exp(
        jnp.arange(0, pred_dim, 2, dtype=jnp.float32)
        * (-math.log(10000.0) / pred_dim)
    )  # (D//2,)

    key = jax.random.PRNGKey(0)

    # Case 1: module-sized small input (single full-extent block).
    B, S, D = 2, 8, pred_dim
    kx, kt, key = jax.random.split(key, 3)
    x = jax.random.normal(kx, (B, S, D), dtype=jnp.float32)
    x = x.at[0, 3, :].set(0.0)            # one all-zero position -> pad-mask True
    times = jax.random.uniform(kt, (B, S), dtype=jnp.float32) * 100.0

    out, mask = repr_time_enc(x, times, div_term, pred_time)
    out, mask = jax.block_until_ready((out, mask))
    ref_out, ref_mask = _reference(x, times, div_term, float(pred_time))
    assert out.shape == (B, S, D) and out.dtype == jnp.float32
    assert mask.shape == (B, S) and mask.dtype == jnp.bool_
    # cos(a) is computed as sin(a + pi/2); at |angle| ~ 1440 (pred_time = 24 h)
    # the f32 rounding of (angle + pi/2) perturbs the argument by up to ~6e-5
    # (plus low-order range-reduction differences), so tolerance is 5e-4 —
    # still catches any parity / indexing / packing bug.
    assert jnp.allclose(out, ref_out, atol=5e-4, rtol=1e-5)
    assert bool(jnp.all(mask == ref_mask))

    # Case 2: larger input exercising the multi-step pipelined "parallel" grid.
    B2, S2 = 4, 1024
    kx2, kt2, key = jax.random.split(key, 3)
    x2 = jax.random.normal(kx2, (B2, S2, pred_dim), dtype=jnp.float32)
    x2 = x2.at[1, 17, :].set(0.0)
    x2 = x2.at[3, 1000, :].set(0.0)
    times2 = jax.random.uniform(kt2, (B2, S2), dtype=jnp.float32) * 100.0

    out2, mask2 = repr_time_enc(x2, times2, div_term, pred_time)
    out2, mask2 = jax.block_until_ready((out2, mask2))
    ref_out2, ref_mask2 = _reference(x2, times2, div_term, float(pred_time))
    assert jnp.allclose(out2, ref_out2, atol=5e-4, rtol=1e-5)
    assert bool(jnp.all(mask2 == ref_mask2))

    print("KERNEL_OK")
</pallas_src>

<mosaic_0001>
module attributes {stable_mosaic.version = 11 : i64} {
  func.func @_repr_time_enc_kernel(%arg0: i32, %arg1: memref<4x128xf32, #tpu.memory_space<vmem>>, %arg2: memref<4x4xf32, #tpu.memory_space<vmem>>, %arg3: memref<4x128xf32, #tpu.memory_space<vmem>>, %arg4: memref<1x128xf32, #tpu.memory_space<vmem>>, %arg5: memref<128x4xbf16, #tpu.memory_space<vmem>>, %arg6: memref<4x128xf32, #tpu.memory_space<vmem>>, %arg7: memref<4x4xi32, #tpu.memory_space<vmem>>) attributes {dimension_semantics = [#tpu.dimension_semantics<parallel>], iteration_bounds = array<i64: 1>, scalar_prefetch = 0 : i64, scratch_operands = 0 : i64, tpu.core_type = #tpu.core_type<tc>, window_params = [{transform_indices = @transform_0, window_bounds = array<i64: 4, 128>}, {transform_indices = @transform_1, window_bounds = array<i64: 4, 4>}, {pipeline_mode = #tpu.pipeline_mode<synchronous>, transform_indices = @transform_2, window_bounds = array<i64: 4, 128>}, {pipeline_mode = #tpu.pipeline_mode<synchronous>, transform_indices = @transform_3, window_bounds = array<i64: 1, 128>}, {pipeline_mode = #tpu.pipeline_mode<synchronous>, transform_indices = @transform_4, window_bounds = array<i64: 128, 4>}, {transform_indices = @transform_5, window_bounds = array<i64: 4, 128>}, {transform_indices = @transform_6, window_bounds = array<i64: 4, 4>}]} {
    %c0 = arith.constant 0 : index
    %c0_0 = arith.constant 0 : index
    %0 = vector.load %arg1[%c0, %c0_0] : memref<4x128xf32, #tpu.memory_space<vmem>>, vector<4x128xf32>
    %c0_1 = arith.constant 0 : index
    %c0_2 = arith.constant 0 : index
    %1 = vector.load %arg2[%c0_1, %c0_2] : memref<4x4xf32, #tpu.memory_space<vmem>>, vector<4x4xf32>
    %c0_3 = arith.constant 0 : index
    %c0_4 = arith.constant 0 : index
    %2 = vector.load %arg3[%c0_3, %c0_4] : memref<4x128xf32, #tpu.memory_space<vmem>>, vector<4x128xf32>
    %c0_5 = arith.constant 0 : index
    %c0_6 = arith.constant 0 : index
    %3 = vector.load %arg4[%c0_5, %c0_6] : memref<1x128xf32, #tpu.memory_space<vmem>>, vector<1x128xf32>
    %c0_7 = arith.constant 0 : index
    %c0_8 = arith.constant 0 : index
    %4 = vector.load %arg5[%c0_7, %c0_8] : memref<128x4xbf16, #tpu.memory_space<vmem>>, vector<128x4xbf16>
    %cst = arith.constant 0.000000e+00 : f32
    %5 = vector.broadcast %cst : f32 to vector<4x128xf32>
    %6 = arith.cmpf oeq, %0, %5 : vector<4x128xf32>
    %7 = arith.extui %6 : vector<4x128xi1> to vector<4x128xi32>
    %8 = arith.sitofp %7 : vector<4x128xi32> to vector<4x128xf32>
    %9 = arith.truncf %8 : vector<4x128xf32> to vector<4x128xbf16>
    %cst_9 = arith.constant dense<0.000000e+00> : vector<4x4xf32>
    %10 = tpu.matmul %9, %4, %cst_9 {dimension_numbers = #tpu.dot_dimension_numbers<[1], [0], [0], [1], [0, 0, 1, 1], [], []>} : vector<4x128xbf16>, vector<128x4xbf16>, vector<4x4xf32> -> vector<4x4xf32>
    %cst_10 = arith.constant 3.150000e+01 : f32
    %11 = vector.broadcast %cst_10 : f32 to vector<4x4xf32>
    %12 = arith.cmpf ogt, %10, %11 : vector<4x4xf32>
    %13 = arith.extui %12 : vector<4x4xi1> to vector<4x4xi32>
    %c0_11 = arith.constant 0 : index
    %c0_12 = arith.constant 0 : index
    %14 = vector.load %arg7[%c0_11, %c0_12] : memref<4x4xi32, #tpu.memory_space<vmem>>, vector<4x4xi32>
    tpu.vector_store %arg7[%c0_11, %c0_12], %13 {strides = array<i32>} : memref<4x4xi32, #tpu.memory_space<vmem>>, vector<4x4xi32>,
    %15 = vector.extract_strided_slice %1 {offsets = [0, 0], sizes = [4, 1], strides = [1, 1]} : vector<4x4xf32> to vector<4x1xf32>
    %16 = vector.extract_strided_slice %2 {offsets = [0, 0], sizes = [1, 128], strides = [1, 1]} : vector<4x128xf32> to vector<1x128xf32>
    %17 = vector.broadcast %15 : vector<4x1xf32> to vector<4x128xf32>
    %18 = vector.broadcast %16 : vector<1x128xf32> to vector<4x128xf32>
    %19 = arith.mulf %17, %18 : vector<4x128xf32>
    %20 = vector.broadcast %3 : vector<1x128xf32> to vector<4x128xf32>
    %21 = arith.addf %20, %19 : vector<4x128xf32>
    %22 = vector.extract_strided_slice %1 {offsets = [0, 1], sizes = [4, 1], strides = [1, 1]} : vector<4x4xf32> to vector<4x1xf32>
    %23 = vector.extract_strided_slice %2 {offsets = [1, 0], sizes = [1, 128], strides = [1, 1]} : vector<4x128xf32> to vector<1x128xf32>
    %24 = vector.broadcast %22 : vector<4x1xf32> to vector<4x128xf32>
    %25 = vector.broadcast %23 : vector<1x128xf32> to vector<4x128xf32>
    %26 = arith.mulf %24, %25 : vector<4x128xf32>
    %27 = arith.addf %21, %26 : vector<4x128xf32>
    %28 = vector.extract_strided_slice %1 {offsets = [0, 2], sizes = [4, 1], strides = [1, 1]} : vector<4x4xf32> to vector<4x1xf32>
    %29 = vector.extract_strided_slice %2 {offsets = [2, 0], sizes = [1, 128], strides = [1, 1]} : vector<4x128xf32> to vector<1x128xf32>
    %30 = vector.broadcast %28 : vector<4x1xf32> to vector<4x128xf32>
    %31 = vector.broadcast %29 : vector<1x128xf32> to vector<4x128xf32>
    %32 = arith.mulf %30, %31 : vector<4x128xf32>
    %33 = arith.addf %27, %32 : vector<4x128xf32>
    %34 = vector.extract_strided_slice %1 {offsets = [0, 3], sizes = [4, 1], strides = [1, 1]} : vector<4x4xf32> to vector<4x1xf32>
    %35 = vector.extract_strided_slice %2 {offsets = [3, 0], sizes = [1, 128], strides = [1, 1]} : vector<4x128xf32> to vector<1x128xf32>
    %36 = vector.broadcast %34 : vector<4x1xf32> to vector<4x128xf32>
    %37 = vector.broadcast %35 : vector<1x128xf32> to vector<4x128xf32>
    %38 = arith.mulf %36, %37 : vector<4x128xf32>
    %39 = arith.addf %33, %38 : vector<4x128xf32>
    %40 = math.sin %39 : vector<4x128xf32>
    %41 = arith.addf %0, %40 : vector<4x128xf32>
    %c0_13 = arith.constant 0 : index
    %c0_14 = arith.constant 0 : index
    %42 = vector.load %arg6[%c0_13, %c0_14] : memref<4x128xf32, #tpu.memory_space<vmem>>, vector<4x128xf32>
    tpu.vector_store %arg6[%c0_13, %c0_14], %41 {strides = array<i32>} : memref<4x128xf32, #tpu.memory_space<vmem>>, vector<4x128xf32>,
    return
  }
  func.func @transform_0(%arg0: i32) -> (i32, i32) {
    %c0_i32 = arith.constant 0 : i32
    %c0_i32_0 = arith.constant 0 : i32
    return %arg0, %c0_i32 : i32, i32
  }
  func.func @transform_1(%arg0: i32) -> (i32, i32) {
    %c0_i32 = arith.constant 0 : i32
    %c0_i32_0 = arith.constant 0 : i32
    return %arg0, %c0_i32 : i32, i32
  }
  func.func @transform_2(%arg0: i32) -> (i32, i32) {
    %c0_i32 = arith.constant 0 : i32
    %c0_i32_0 = arith.constant 0 : i32
    %c0_i32_1 = arith.constant 0 : i32
    return %c0_i32, %c0_i32_0 : i32, i32
  }
  func.func @transform_3(%arg0: i32) -> (i32, i32) {
    %c0_i32 = arith.constant 0 : i32
    %c0_i32_0 = arith.constant 0 : i32
    %c0_i32_1 = arith.constant 0 : i32
    return %c0_i32, %c0_i32_0 : i32, i32
  }
  func.func @transform_4(%arg0: i32) -> (i32, i32) {
    %c0_i32 = arith.constant 0 : i32
    %c0_i32_0 = arith.constant 0 : i32
    %c0_i32_1 = arith.constant 0 : i32
    return %c0_i32, %c0_i32_0 : i32, i32
  }
  func.func @transform_5(%arg0: i32) -> (i32, i32) {
    %c0_i32 = arith.constant 0 : i32
    %c0_i32_0 = arith.constant 0 : i32
    return %arg0, %c0_i32 : i32, i32
  }
  func.func @transform_6(%arg0: i32) -> (i32, i32) {
    %c0_i32 = arith.constant 0 : i32
    %c0_i32_0 = arith.constant 0 : i32
    return %arg0, %c0_i32 : i32, i32
  }
}

</mosaic_0001>

<bundles_post_ra>
// kernel: tpu_custom_call.1
= control target key start
LH: loop header
LB: loop body
LE: loop exit
PB: predicated region body
PF: predicated region fallthrough
CT: control target
= control target key end

     0   :  { %12 = vsyncpa [#allocation3], 0  ;;  %v451_v1 = vmov 0   ;;  %v452_v2 = vmov 2   ;;  %s611_s0 = inlined_call_operand.vmem [shape: f32[4,128], index: 0, kind: input, shape index: {}]   ;;  %s612_s1 = inlined_call_operand.vmem [shape: f32[4,4], index: 1, kind: input, shape index: {}]   ;;  %s613_s2 = inlined_call_operand.vmem [shape: f32[4,128], index: 2, kind: input, shape index: {}]   ;;  %s614_s3 = inlined_call_operand.vmem [shape: f32[1,128], index: 3, kind: input, shape index: {}]   ;;  %s615_s4 = inlined_call_operand.vmem [shape: bf16[128,4], index: 4, kind: input, shape index: {}]   ;;  %s616_s5 = inlined_call_operand.hbm [shape: f32[4,128], index: 5, kind: output, shape index: {0}]   ;;  %s617_s6 = inlined_call_operand.hbm [shape: s32[4,4], index: 6, kind: output, shape index: {1}]  }
   0x1   :  { %v25_v0 = vld [vmem:[%s612_s1] sm:$0xf]  ;;  %393 = vset.pattern.permute.xlu0 %v451_v1  ;;  %395 = vset.pattern.permute.xlu1 %v452_v2  ;;  %v379_v3 = vld [vmem:[%s615_s4 + $0x38] sm:$0xff]  ;;  %v378_v4 = vld [vmem:[%s615_s4 + $0x30] sm:$0xff] }
   0x2   :  { %115 = vperm.xlu0 %393, %v25_v0   ;;  %132 = vperm.xlu1 %395, %v25_v0  }
   0x3   :  { %96 = vmatpush.bf16.msra.mxu0 %v379_v3 }
   0x4   :  { %13 = vsyncpa [#allocation5], 0  ;;  %v377_v5 = vld [vmem:[%s615_s4 + $0x28] sm:$0xff]  ;;  %v453_v6 = vmov 1   ;;  %v454_v7 = vmov 3   ;;  %v376_v8 = vld [vmem:[%s615_s4 + $0x20] sm:$0xff] }
   0x5   :  { %v375_v9 = vld [vmem:[%s615_s4 + $0x18] sm:$0xff]  ;;  %v374_v10 = vld [vmem:[%s615_s4 + $0x10] sm:$0xff]  ;;  %v373_v11 = vld [vmem:[%s615_s4 + $0x8] sm:$0xff]  ;;  %v455_v14 = vmov 1.0|1.0   ;;  %s320_s20 = sshll.u32 %s617_s6, 4  ;;  %s321_s20 = int_to_ptr.hbm [resolvable:$true] %s320_s20 }
   0x6   :  { %v527_v12 = vld [vmem:[%s611_s0] sm:$0xf]  ;;  %v456_v44 = vmov 2102212464   ;;  %v457_v46 = vmov 920167782  }
   0x7   :  { %97 = vmatpush.bf16.msra.mxu0 %v378_v4  ;;  %v372_v13 = vld [vmem:[%s615_s4] sm:$0xff]  ;;  %vm44_vm0 = vcmp.eq.f32.partialorder %v527_v12, 0.0  ;;  %v458_v49 = vmov 1326507024   ;;  %v459_v51 = vmov 683565275  }
   0x8   :  { %vm367_vm1 = vmpackc.low %vm44_vm0, %vm44_vm0  ;;  %v26_v15 = vld [vmem:[%s613_s2] sm:$0xf]  ;;  %v460_v53 = vmov 2475754826   ;;  %v461_v56 = vmov 2131351028  }
   0x9   :  { %v118_v18 = vperm.slane %v26_v15, 0  ;;  %v398_v19 = vld [vmem:[%s614_s3] ss:$0 sm:$0xff]  ;;  %v128_v21 = vperm.slane %v26_v15, 1  ;;  %v135_v22 = vperm.slane %v26_v15, 2  ;;  %v142_v23 = vperm.slane %v26_v15, 3 }
   0xa   :  { %394 = vset.pattern.permute.xlu0 %v453_v6  ;;  %396 = vset.pattern.permute.xlu1 %v454_v7  ;;  %s462_s2 = smov [#allocation4]   ;;  %vm111_vm7 = vcmask 27648   ;;  %s463_s6 = smov [#allocation2]  }
   0xb   :  { %125 = vperm.xlu0 %394, %v25_v0   ;;  %139 = vperm.xlu1 %396, %v25_v0   ;;  %s579_s3 = sshll.u32 %s462_s2, 4  ;;  %s307_s21 = sshll.u32 %s463_s6, 4  ;;  %s319_s3 = int_to_ptr.vmem [resolvable:$true] %s579_s3  ;;  %s308_s21 = int_to_ptr.vmem [resolvable:$true] %s307_s21 }
   0xc   :  { %98 = vmatpush.bf16.msra.mxu0 %v377_v5  ;;  %s309_s24 = sshll.u32 %s616_s5, 4  ;;  %s310_s24 = int_to_ptr.hbm [resolvable:$true] %s309_s24 }
  0x10   :  { %99 = vmatpush.bf16.msra.mxu0 %v376_v8 }
  0x13   :  { %397 = vset.pattern.permute.xlu0 %v454_v7 }
  0x14   :  { %100 = vmatpush.bf16.msra.mxu0 %v375_v9 }
  0x18   :  { %101 = vmatpush.bf16.msra.mxu0 %v374_v10 }
  0x1c   :  { %102 = vmatpush.bf16.msra.mxu0 %v373_v11 }
  0x20   :  { %103 = vmatpush.bf16.msra.mxu0 %v372_v13 }
  0x23   :  { %368 = vmatmul.msk.bf16.vlgmr.msra.gmra.mxu0 %vm367_vm1, %v455_v14 }
  0x74   :  { %v116_v16 = vpop.permute.xlu0 %115  ;;  %v133_v17 = vpop.permute.xlu1 %132 }
  0x75   :  { %v119_v20 = vmul.f32 %v118_v18, %v116_v16  ;;  %v136_v28 = vmul.f32 %v135_v22, %v133_v17 }
  0x77   :  { %v123_v26 = vadd.f32 %v398_v19, %v119_v20 }
  0x7d   :  { %v126_v24 = vpop.permute.xlu0 %125  ;;  %v140_v25 = vpop.permute.xlu1 %139 }
  0x7e   :  { %v129_v27 = vmul.f32 %v128_v21, %v126_v24  ;;  %v143_v30 = vmul.f32 %v142_v23, %v140_v25 }
  0x80   :  { %v130_v29 = vadd.f32 %v129_v27, %v123_v26 }
  0x82   :  { %v137_v31 = vadd.f32 %v136_v28, %v130_v29 }
  0x84   :  { %v539_v32 = vadd.f32 %v143_v30, %v137_v31 }
  0x86   :  { %v148_v33 = vand.u32 2139095040, %v539_v32  ;;  %v145_v36 = vand.u32 2147483647, %v539_v32  ;;  %vm147_vm0 = vcmp.lt.s32.totalorder %v539_v32, 0 }
  0x88   :  { %v149_v34 = vshrl.u32 %v148_v33, 23  ;;  %v152_v38 = vand.u32 8388607, %v145_v36  ;;  %vm146_vm1 = vcmp.le.f32.partialorder %v145_v36, 0.7853982 }
  0x8a   :  { %v369_v35 = vadd.s32 4294967169, %v149_v34  ;;  %v153_v42 = vor.u32 8388608, %v152_v38 }
  0x8c   :  { %v155_v37 = vadd.s32 1, %v369_v35  ;;  %v555_v63 = vshll.u32 %v153_v42, 8 }
  0x8e   :  { %vm156_vm2 = vcmp.gt.s32.totalorder %v155_v37, 0  ;;  %v194_v10 = vand.u32 65535, %v555_v63  ;;  %v195_v13 = vshrl.u32 %v555_v63, 16 }
  0x8f   :  { %v157_v39 = vsel %vm156_vm2, %v155_v37, 0 }
  0x90   :  { %v159_v40 = vand.u32 31, %v157_v39  ;;  %v547_v43 = vshrl.u32 %v157_v39, 5 }
  0x92   :  { %v545_v41 = vsub.s32 32, %v159_v40  ;;  %v171_v45 = vshll.u32 %v456_v44, %v159_v40  ;;  %v174_v47 = vshll.u32 %v457_v46, %v159_v40  ;;  %v162_v52 = vshll.u32 %v459_v51, %v159_v40 }
  0x93   :  { %v165_v55 = vshll.u32 %v460_v53, %v159_v40  ;;  %v168_v58 = vshll.u32 %v461_v56, %v159_v40  ;;  %vm180_vm3 = vcmp.lt.s32.totalorder %v547_v43, 4  ;;  %vm177_vm4 = vcmp.lt.s32.totalorder %v547_v43, 1 }
  0x94   :  { %v172_v48 = vshrl.u32 %v457_v46, %v545_v41  ;;  %v175_v50 = vshrl.u32 %v458_v49, %v545_v41  ;;  %v163_v54 = vshrl.u32 %v460_v53, %v545_v41  ;;  %v166_v57 = vshrl.u32 %v461_v56, %v545_v41 }
  0x95   :  { %v169_v59 = vshrl.u32 %v456_v44, %v545_v41  ;;  %vm179_vm5 = vcmp.lt.s32.totalorder %v547_v43, 3  ;;  %vm178_vm6 = vcmp.lt.s32.totalorder %v547_v43, 2  ;;  %v161_v40 = vshrl.u32 %v459_v51, %v545_v41 }
  0x96   :  { %v173_v60 = vor.u32 %v172_v48, %v171_v45  ;;  %v176_v61 = vor.u32 %v175_v50, %v174_v47  ;;  %v164_v62 = vor.u32 %v163_v54, %v162_v52  ;;  %v167_v0 = vor.u32 %v166_v57, %v165_v55 }
  0x97   :  { %v170_v2 = vor.u32 %v169_v59, %v168_v58 }
  0x98   :  { %v186_v3 = vsel %vm180_vm3, %v173_v60, 920167782  ;;  %v190_v4 = vsel %vm180_vm3, %v176_v61, 1326507024  ;;  %v185_v5 = vsel %vm177_vm4, %v164_v62, %v167_v0  ;;  %v181_v48 = vsel %vm177_vm4, %v161_v40, %v164_v62 }
  0x99   :  { %v187_v6 = vsel %vm179_vm5, %v170_v2, %v186_v3  ;;  %v189_v7 = vsel %vm177_vm4, %v167_v0, %v170_v2  ;;  %v191_v9 = vsel %vm179_vm5, %v173_v60, %v190_v4  ;;  %v182_v37 = vsel %vm180_vm3, %v170_v2, 2102212464 }
  0x9a   :  { %v188_v8 = vsel %vm178_vm6, %v185_v5, %v187_v6  ;;  %v192_v11 = vsel %vm178_vm6, %v189_v7, %v191_v9  ;;  %v183_v49 = vsel %vm179_vm5, %v167_v0, %v182_v37  ;;  %vm288_vm5 = vweird.f32 %v539_v32 }
  0x9b   :  { %v218_v14 = vand.u32 65535, %v188_v8  ;;  %v219_v15 = vshrl.u32 %v188_v8, 16  ;;  %v196_v16 = vand.u32 65535, %v192_v11  ;;  %v197_v17 = vshrl.u32 %v192_v11, 16 }
  0x9c   :  { %v184_v56 = vsel %vm178_vm6, %v181_v48, %v183_v49 }
  0x9d   :  { %v221_v18 = vmul.u32 %v219_v15, %v194_v10  ;;  %v222_v19 = vmul.u32 %v218_v14, %v195_v13  ;;  %v199_v20 = vmul.u32 %v197_v17, %v194_v10  ;;  %v200_v21 = vmul.u32 %v196_v16, %v195_v13 }
  0x9e   :  { %v220_v22 = vmul.u32 %v218_v14, %v194_v10  ;;  %v223_v23 = vmul.u32 %v219_v15, %v195_v13  ;;  %v198_v26 = vmul.u32 %v196_v16, %v194_v10  ;;  %v201_v27 = vmul.u32 %v197_v17, %v195_v13 }
  0x9f   :  { %v224_v24 = vshll.u32 %v221_v18, 16  ;;  %v202_v28 = vshll.u32 %v199_v20, 16  ;;  %v226_v29 = vshll.u32 %v222_v19, 16  ;;  %v204_v30 = vshll.u32 %v200_v21, 16 }
  0xa0   :  { %v105_v25 = vpop.f32.mrf.mxu0  ;;  %v225_v46 = vshrl.u32 %v221_v18, 16  ;;  %v203_v50 = vshrl.u32 %v199_v20, 16  ;;  %v227_v53 = vshrl.u32 %v222_v19, 16  ;;  %v205_v51 = vshrl.u32 %v200_v21, 16 }
  0xa1   :  { %vm109_vm8 = vcmp.gt.f32.partialorder %v105_v25, 31.5  ;;  %vm228_vm9 = vc.u32 %v220_v22, %v224_v24  ;;  %v230_v31 = vadd.s32 %v224_v24, %v220_v22  ;;  %vm206_vm10 = vc.u32 %v198_v26, %v202_v28 }
  0xa2   :  { %v110_v33 = vsel %vm109_vm8, 1, %v451_v1  ;;  %v208_v34 = vadd.s32 %v202_v28, %v198_v26  ;;  %v229_v35 = vsel %vm228_vm9, 1, %v451_v1  ;;  %v207_v38 = vsel %vm206_vm10, 1, %v451_v1 }
  0xa3   :  { %112 = vst.msk [vmem:[#allocation4] sm:$0xf] %vm111_vm7, %v110_v33  ;;  %v231_v39 = vadd.s32 %v229_v35, %v223_v23  ;;  %vm232_vm11 = vc.u32 %v230_v31, %v226_v29  ;;  %v209_v42 = vadd.s32 %v207_v38, %v201_v27  ;;  %v234_v58 = vadd.s32 %v230_v31, %v226_v29 }
  0xa4   :  { %vm210_vm12 = vc.u32 %v208_v34, %v204_v30  ;;  %v233_v44 = vsel %vm232_vm11, 1, %v451_v1  ;;  %323 = dma.vmem_to_hbm [thread:$0]  %s319_s3, 64, %s321_s20, [#allocation5]   ;;  %v238_v60 = vmul.u32 %v555_v63, %v184_v56 }
  0xa5   :  { %v211_v45 = vsel %vm210_vm12, 1, %v451_v1  ;;  %v235_v47 = vadd.s32 %v233_v44, %v231_v39 }
  0xa6   :  { %v213_v52 = vadd.s32 %v211_v45, %v209_v42 }
  0xa7   :  { %v236_v54 = vadd.s32 %v235_v47, %v225_v46 }
  0xa8   :  { %v107_v41 = vpop.f32.mrf.mxu0  ;;  %v214_v55 = vadd.s32 %v213_v52, %v203_v50 }
  0xa9   :  { %v237_v57 = vadd.s32 %v236_v54, %v227_v53 }
  0xaa   :  { %v215_v1 = vadd.s32 %v214_v55, %v205_v51 }
  0xab   :  { %v241_v59 = vadd.s32 1, %v237_v57 }
  0xac   :  { %vm240_vm13 = vc.u32 %v215_v1, %v234_v58  ;;  %v239_v9 = vadd.s32 %v234_v58, %v215_v1 }
  0xad   :  { %v242_v61 = vsel %vm240_vm13, %v241_v59, %v237_v57 }
  0xae   :  { %v243_v62 = vadd.s32 %v242_v61, %v238_v60 }
  0xb0   :  { %v244_v0 = vadd.s32 536870912, %v243_v62 }
  0xb2   :  { %v245_v2 = vshrl.u32 %v244_v0, 30 }
  0xb4   :  { %v246_v3 = vshll.u32 %v245_v2, 30  ;;  %v269_v23 = vsub.s32 4, %v245_v2 }
  0xb6   :  { %v247_v4 = vsub.s32 %v243_v62, %v246_v3  ;;  %v270_v28 = vsel %vm147_vm0, %v269_v23, %v245_v2 }
  0xb7   :  { %v272_v31 = vsel %vm146_vm1, 0, %v270_v28 }
  0xb8   :  { %vm248_vm14 = vcmp.lt.s32.totalorder %v247_v4, 0  ;;  %v249_v5 = vsub.s32 0, %v247_v4  ;;  %v289_v38 = vadd.s32 3, %v272_v31 }
  0xba   :  { %v250_v6 = vsel %vm248_vm14, %v249_v5, %v247_v4  ;;  %v290_v44 = vand.u32 3, %v289_v38 }
  0xbb   :  { %v251_v7 = vclz %v250_v6 }
  0xbc   :  { %vm292_vm2 = vcmp.eq.s32.totalorder %v290_v44, 0  ;;  %vm295_vm3 = vcmp.eq.s32.totalorder %v290_v44, 2  ;;  %vm291_vm4 = vcmp.lt.s32.totalorder %v290_v44, 2 }
  0xbd   :  { %v370_v8 = vadd.s32 4294967294, %v251_v7 }
  0xbf   :  { %vm371_vm15 = vcmp.lt.s32.totalorder %v370_v8, 0 }
  0xc0   :  { %v254_v43 = vsel %vm371_vm15, 0, %v370_v8 }
  0xc1   :  { %v255_v10 = vsub.s32 32, %v254_v43  ;;  %v259_v11 = vsub.s32 4294967266, %v254_v43  ;;  %v256_v13 = vshll.u32 %v247_v4, %v254_v43 }
  0xc3   :  { %v257_v14 = vshrl.u32 %v239_v9, %v255_v10  ;;  %v260_v63 = vadd.s32 127, %v259_v11 }
  0xc5   :  { %v258_v15 = vor.u32 %v257_v14, %v256_v13  ;;  %v261_v16 = vshll.u32 %v260_v63, 23 }
  0xc7   :  { %v262_v17 = vor.u32 4788187, %v261_v16  ;;  %v265_v19 = vcvt.s32.f32 %v258_v15 }
  0xc9   :  { %v263_v18 = vand.u32 2147483647, %v262_v17 }
  0xcb   :  { %v266_v20 = vmul.f32 %v265_v19, %v263_v18 }
  0xcd   :  { %v267_v21 = vxor.u32 2147483648, %v266_v20 }
  0xcf   :  { %v268_v22 = vsel %vm147_vm0, %v267_v21, %v266_v20 }
  0xd0   :  { %v271_v24 = vsel %vm146_vm1, %v539_v32, %v268_v22 }
  0xd1   :  { %v273_v25 = vmul.f32 %v271_v24, %v271_v24 }
  0xd3   :  { %v274_v26 = vmul.f32 -0.001358992, %v273_v25  ;;  %v281_v27 = vmul.f32 -0.00019511016, %v273_v25 }
  0xd5   :  { %v275_v29 = vadd.f32 0.041655596, %v274_v26  ;;  %v282_v30 = vadd.f32 0.008332121, %v281_v27 }
  0xd7   :  { %v276_v33 = vmul.f32 %v275_v29, %v273_v25  ;;  %v283_v34 = vmul.f32 %v282_v30, %v273_v25 }
  0xd9   :  { %v277_v35 = vadd.f32 -0.4999988, %v276_v33  ;;  %v284_v37 = vadd.f32 -0.16666654, %v283_v34 }
  0xdb   :  { %v278_v39 = vmul.f32 %v277_v35, %v273_v25  ;;  %v285_v40 = vmul.f32 %v284_v37, %v273_v25 }
  0xdd   :  { %v279_v42 = vadd.f32 1.0, %v278_v39  ;;  %v286_v36 = vadd.f32 1.0, %v285_v40 }
  0xdf   :  { %v287_v45 = vmul.f32 %v286_v36, %v271_v24  ;;  %v296_v46 = vxor.u32 2147483648, %v279_v42 }
  0xe1   :  { %v293_v47 = vxor.u32 2147483648, %v287_v45  ;;  %v297_v49 = vsel %vm295_vm3, %v296_v46, %v287_v45 }
  0xe3   :  { %v294_v48 = vsel %vm292_vm2, %v279_v42, %v293_v47 }
  0xe4   :  { %v298_v50 = vsel %vm291_vm4, %v294_v48, %v297_v49 }
  0xe5   :  { %v299_v52 = vsel %vm288_vm5, nan, %v298_v50 }
  0xe6   :  { %v300_v53 = vadd.f32 %v299_v52, %v527_v12 }
  0xe8   :  { %301 = vst [vmem:[#allocation2] sm:$0xf] %v300_v53 }
  0xe9   :  { %312 = dma.vmem_to_hbm [thread:$0]  %s308_s21, 64, %s310_s24, [#allocation3]  }
  0xea   :  { %447 = dma.done.wait [#allocation3], 64  }
  0xeb   :  { %448 = vsyncadd [#allocation3], 4294967232 }
  0xec   :  { %449 = dma.done.wait [#allocation5], 64  }
  0xed   :  { %450 = vsyncadd [#allocation5], 4294967232 }
  0xee   :  { %332 = vsyncpa [#allocation3], 1 }
  0xef   :  { %333 = vsyncpa [#allocation5], 1 }

</bundles_post_ra>
